<compile_context>
chip_gen: v7x
topology: tpu7x:2x2x1
jax: 0.10.0
libtpu: 0.0.40
codegen_flags: <defaults>
</compile_context>

<pallas_src>
import jax
import jax.numpy as jnp
from jax import lax
from jax.experimental import pallas as pl
from jax.experimental.pallas import tpu as pltpu


_LANES = 128
_NCOLS = 8                      # pad the user column to N=8 so the dot hits the MXU
_MAX_TILE_BYTES = 8 * 1024 * 1024
_VMEM_LIMIT_BYTES = 40 << 20    # fits v7x's 64 MiB physical VMEM with headroom


# --------------------------------------------------------------------------- #
# Helpers
# --------------------------------------------------------------------------- #
def _sublane_multiple(dtype):
    # f32 -> 8, bf16/f16 -> 16, int8/fp8 -> 32 (sublane packing granularity)
    nbytes = jnp.dtype(dtype).itemsize
    return max(8, 32 // max(nbytes, 1))


def _round_up(x, m):
    return ((x + m - 1) // m) * m


def _choose_tile_rows(total_rows, row_bytes, sublane, max_tile_bytes=_MAX_TILE_BYTES):
    """Largest ~8 MiB row tile; keeps the grid >= 2 steps for v7x megacore."""
    tm = max(1, max_tile_bytes // max(row_bytes, 1))
    tm = max(sublane, (tm // sublane) * sublane)
    tm = min(tm, _round_up(total_rows, sublane))
    # Keep the ("parallel",) row grid splittable across two TensorCores (v7x).
    if total_rows > sublane and pl.cdiv(total_rows, tm) < 2:
        tm = min(tm, max(sublane, _round_up(pl.cdiv(total_rows, 2), sublane)))
    return tm


def _compiler_params():
    return pltpu.CompilerParams(
        dimension_semantics=("parallel",),
        vmem_limit_bytes=_VMEM_LIMIT_BYTES,
    )


def _mxu_operand_dtype(items_dtype):
    # bf16 items feed the MXU directly (no in-kernel upcast, halves vreg
    # pressure); everything else reduces against an f32 resident operand.
    if jnp.dtype(items_dtype) == jnp.dtype(jnp.bfloat16):
        return jnp.bfloat16
    return jnp.float32


def _mxu_dot(x, w):
    # HIGHEST only matters for f32 operands (multi-pass f32 matmul); the MXU is
    # idle in this DMA-bound kernel so the extra passes are free.
    prec = lax.Precision.HIGHEST if x.dtype == jnp.float32 else None
    return jnp.dot(x, w, preferred_element_type=jnp.float32, precision=prec)


# --------------------------------------------------------------------------- #
# Kernels
# --------------------------------------------------------------------------- #
def _score_bcast_kernel(u_ref, x_ref, o_ref):
    # u_ref: (D, 8) resident user column replicated across 8 MXU output lanes.
    # x_ref: (tm, D) streamed item tile (native dtype).
    x = x_ref[...]
    if x.dtype != u_ref.dtype:
        x = x.astype(u_ref.dtype)
    o_ref[...] = _mxu_dot(x, u_ref[...])                     # (tm, 8) f32


def _score_packed_kernel(m_ref, x_ref, o_ref):
    # m_ref: (128, pack) resident block-diagonal reduce matrix with the user
    #        values folded in (m[l, p] = u[l % D] iff l // D == p).
    # x_ref: (tm, 128) streamed packed item tile (pack = 128 // D items / row).
    x = x_ref[...]
    if x.dtype != m_ref.dtype:
        x = x.astype(m_ref.dtype)
    o_ref[...] = _mxu_dot(x, m_ref[...])                     # (tm, pack) f32


def _score_rowwise_kernel(u_ref, x_ref, o_ref):
    # Non-broadcast fallback: per-row user vector, plain VPU mul + lane reduce.
    prod = u_ref[...].astype(jnp.float32) * x_ref[...].astype(jnp.float32)
    o_ref[...] = jnp.sum(prod, axis=-1, keepdims=True)       # (tm, 1) f32


# --------------------------------------------------------------------------- #
# pallas_call wrappers
# --------------------------------------------------------------------------- #
def _pallas_scores_broadcast(user_emb, items_emb, tile_rows=None):
    T, D = items_emb.shape
    op_dtype = _mxu_operand_dtype(items_emb.dtype)
    u_cols = jnp.tile(user_emb.reshape(D, 1).astype(op_dtype), (1, _NCOLS))

    sub = _sublane_multiple(items_emb.dtype)
    row_bytes = D * jnp.dtype(items_emb.dtype).itemsize
    tm = tile_rows if tile_rows is not None else _choose_tile_rows(T, row_bytes, sub)
    grid = (pl.cdiv(T, tm),)

    out = pl.pallas_call(
        _score_bcast_kernel,
        out_shape=jax.ShapeDtypeStruct((T, _NCOLS), jnp.float32),
        grid=grid,
        in_specs=[
            pl.BlockSpec((D, _NCOLS), lambda i: (0, 0)),     # resident user columns
            pl.BlockSpec((tm, D), lambda i: (i, 0)),         # streamed item tiles
        ],
        out_specs=pl.BlockSpec((tm, _NCOLS), lambda i: (i, 0)),
        compiler_params=_compiler_params(),
    )(u_cols, items_emb)
    return out[:, 0]


def _pallas_scores_packed(user_emb, items_emb, tile_rows=None):
    T, D = items_emb.shape
    pack = _LANES // D
    rows = T // pack
    op_dtype = _mxu_operand_dtype(items_emb.dtype)
    x_packed = items_emb.reshape(rows, _LANES)               # metadata reshape

    # Fold user values into the block-diagonal reduce matrix (built once, tiny).
    # For bf16 items the matrix is bf16 so the MXU sees bf16 x bf16 (matches the
    # input precision); otherwise it stays f32.
    lane = jnp.arange(_LANES)
    u_vec = user_emb.reshape(-1).astype(jnp.float32)
    m = jnp.where(
        (lane // D)[:, None] == jnp.arange(pack)[None, :],
        u_vec[lane % D][:, None],
        0.0,
    ).astype(op_dtype)                                       # (128, pack)

    sub = _sublane_multiple(items_emb.dtype)
    row_bytes = _LANES * jnp.dtype(items_emb.dtype).itemsize
    tm = tile_rows if tile_rows is not None else _choose_tile_rows(rows, row_bytes, sub)
    grid = (pl.cdiv(rows, tm),)

    out = pl.pallas_call(
        _score_packed_kernel,
        out_shape=jax.ShapeDtypeStruct((rows, pack), jnp.float32),
        grid=grid,
        in_specs=[
            pl.BlockSpec((_LANES, pack), lambda i: (0, 0)),  # resident reduce matrix
            pl.BlockSpec((tm, _LANES), lambda i: (i, 0)),    # streamed packed items
        ],
        out_specs=pl.BlockSpec((tm, pack), lambda i: (i, 0)),
        compiler_params=_compiler_params(),
    )(m, x_packed)
    return out.reshape(T)


def _pallas_scores_rowwise(user_emb, items_emb, tile_rows=None):
    T, D = items_emb.shape
    sub = _sublane_multiple(items_emb.dtype)
    row_bytes = D * jnp.dtype(items_emb.dtype).itemsize
    tm = tile_rows if tile_rows is not None else _choose_tile_rows(T, row_bytes, sub)
    grid = (pl.cdiv(T, tm),)

    out = pl.pallas_call(
        _score_rowwise_kernel,
        out_shape=jax.ShapeDtypeStruct((T, 1), jnp.float32),
        grid=grid,
        in_specs=[
            pl.BlockSpec((tm, D), lambda i: (i, 0)),
            pl.BlockSpec((tm, D), lambda i: (i, 0)),
        ],
        out_specs=pl.BlockSpec((tm, 1), lambda i: (i, 0)),
        compiler_params=_compiler_params(),
    )(user_emb, items_emb)
    return out[:, 0]


# --------------------------------------------------------------------------- #
# Public forward
# --------------------------------------------------------------------------- #
def pieckipe_forward(user_emb, items_emb, *, force_pallas=False,
                     min_pallas_elements=1 << 15, tile_rows=None):
    """user_emb: [1, D] (or [D] / [T, D]); items_emb: [T, D] -> scores: [T] (f32)."""
    user_emb = jnp.asarray(user_emb)
    items_emb = jnp.asarray(items_emb)
    if user_emb.ndim == 1:
        user_emb = user_emb[None, :]
    T, D = items_emb.shape
    if user_emb.shape[0] not in (1, T) or user_emb.shape[1] != D:
        raise ValueError(
            f"user_emb shape {user_emb.shape} not broadcastable against "
            f"items_emb shape {items_emb.shape}")

    # Tiny problems: XLA's fused elementwise+reduce beats kernel dispatch cost.
    if not force_pallas and items_emb.size < min_pallas_elements:
        return jnp.sum(user_emb.astype(jnp.float32) * items_emb.astype(jnp.float32),
                       axis=-1)

    broadcast = user_emb.shape[0] == 1
    if broadcast:
        if D < _LANES and _LANES % D == 0 and T % (_LANES // D) == 0:
            return _pallas_scores_packed(user_emb, items_emb, tile_rows)
        return _pallas_scores_broadcast(user_emb, items_emb, tile_rows)
    return _pallas_scores_rowwise(user_emb, items_emb, tile_rows)


class PIECKIPE:
    """JAX/Pallas port of the attack module's forward pass."""

    def __init__(self, target_items, m_item, dim, key):
        self._target_ = target_items
        self.m_item = m_item
        self.dim = dim
        # nn.Embedding(1, dim) with normal_(std=0.01) init, deterministic
        self.user_emb_weight = 0.01 * jax.random.normal(key, (1, dim), jnp.float32)
        self.rank, self.old_items_emb = (None, None)
        self.unpoprank = None
        self.weighted = 0
        # TODO(synk): train_/train_on_user_emb (topk, cosine-sim loss, autograd)
        # are training-time host logic, not part of the forward hot path.

    def forward(self, user_emb, items_emb, *, force_pallas=False):
        return pieckipe_forward(user_emb, items_emb, force_pallas=force_pallas)


if __name__ == "__main__":
    key = jax.random.PRNGKey(0)
    k_mod, k_items_a, k_items_b, k_user_b, k_items_c, k_user_c = jax.random.split(key, 6)

    # Case A: module-native shapes (dim=32 < 128) -> lane-packed MXU path
    # (4 items per vreg row, user folded into a block-diagonal reduce matrix,
    #  2-step grid so v7x megacore can split it).
    T_a, dim_a = 64, 32
    model = PIECKIPE(target_items=list(range(T_a)), m_item=256, dim=dim_a, key=k_mod)
    items_a = 0.01 * jax.random.normal(k_items_a, (T_a, dim_a), jnp.float32)
    user_a = model.user_emb_weight
    scores_a = jax.block_until_ready(model.forward(user_a, items_a, force_pallas=True))
    ref_a = jnp.sum(user_a * items_a, axis=-1)
    assert scores_a.shape == (T_a,)
    assert jnp.allclose(scores_a, ref_a, atol=1e-6, rtol=1e-5), (scores_a, ref_a)

    # Case B: lane-wide D with a forced small tile -> generic broadcast MXU path
    # (resident (D, 8) user columns, multi-step grid, masked tail tile).
    T_b, dim_b = 40, 128
    items_b = 0.01 * jax.random.normal(k_items_b, (T_b, dim_b), jnp.float32)
    user_b = 0.01 * jax.random.normal(k_user_b, (1, dim_b), jnp.float32)
    scores_b = jax.block_until_ready(
        pieckipe_forward(user_b, items_b, force_pallas=True, tile_rows=16))
    ref_b = jnp.sum(user_b * items_b, axis=-1)
    assert scores_b.shape == (T_b,)
    assert jnp.allclose(scores_b, ref_b, atol=1e-6, rtol=1e-5), (scores_b, ref_b)

    # Case C: per-row user embeddings (non-broadcast) -> row-wise VPU fallback.
    T_c, dim_c = 24, 256
    items_c = 0.01 * jax.random.normal(k_items_c, (T_c, dim_c), jnp.float32)
    user_c = 0.01 * jax.random.normal(k_user_c, (T_c, dim_c), jnp.float32)
    scores_c = jax.block_until_ready(
        pieckipe_forward(user_c, items_c, force_pallas=True, tile_rows=8))
    ref_c = jnp.sum(user_c * items_c, axis=-1)
    assert scores_c.shape == (T_c,)
    assert jnp.allclose(scores_c, ref_c, atol=1e-6, rtol=1e-5), (scores_c, ref_c)

    print("KERNEL_OK")
</pallas_src>

<mosaic_0001>
module attributes {stable_mosaic.version = 11 : i64} {
  func.func @_score_packed_kernel(%arg0: i32, %arg1: memref<128x4xf32, #tpu.memory_space<vmem>>, %arg2: memref<8x128xf32, #tpu.memory_space<vmem>>, %arg3: memref<8x4xf32, #tpu.memory_space<vmem>>) attributes {dimension_semantics = [#tpu.dimension_semantics<parallel>], iteration_bounds = array<i64: 2>, scalar_prefetch = 0 : i64, scratch_operands = 0 : i64, tpu.core_type = #tpu.core_type<tc>, window_params = [{pipeline_mode = #tpu.pipeline_mode<synchronous>, transform_indices = @transform_0, window_bounds = array<i64: 128, 4>}, {transform_indices = @transform_1, window_bounds = array<i64: 8, 128>}, {transform_indices = @transform_2, window_bounds = array<i64: 8, 4>}]} {
    %c0 = arith.constant 0 : index
    %c0_0 = arith.constant 0 : index
    %0 = vector.load %arg2[%c0, %c0_0] : memref<8x128xf32, #tpu.memory_space<vmem>>, vector<8x128xf32>
    %c0_1 = arith.constant 0 : index
    %c0_2 = arith.constant 0 : index
    %1 = vector.load %arg1[%c0_1, %c0_2] : memref<128x4xf32, #tpu.memory_space<vmem>>, vector<128x4xf32>
    %cst = arith.constant dense<0.000000e+00> : vector<8x4xf32>
    %2 = tpu.matmul %0, %1, %cst {dimension_numbers = #tpu.dot_dimension_numbers<[1], [0], [0], [1], [0, 0, 1, 1], [], []>, precision = #tpu.contract_precision<fp32>} : vector<8x128xf32>, vector<128x4xf32>, vector<8x4xf32> -> vector<8x4xf32>
    %c0_3 = arith.constant 0 : index
    %c0_4 = arith.constant 0 : index
    %3 = vector.load %arg3[%c0_3, %c0_4] : memref<8x4xf32, #tpu.memory_space<vmem>>, vector<8x4xf32>
    tpu.vector_store %arg3[%c0_3, %c0_4], %2 {strides = array<i32>} : memref<8x4xf32, #tpu.memory_space<vmem>>, vector<8x4xf32>,
    return
  }
  func.func @transform_0(%arg0: i32) -> (i32, i32) {
    %c0_i32 = arith.constant 0 : i32
    %c0_i32_0 = arith.constant 0 : i32
    %c0_i32_1 = arith.constant 0 : i32
    return %c0_i32, %c0_i32_0 : i32, i32
  }
  func.func @transform_1(%arg0: i32) -> (i32, i32) {
    %c0_i32 = arith.constant 0 : i32
    %c0_i32_0 = arith.constant 0 : i32
    return %arg0, %c0_i32 : i32, i32
  }
  func.func @transform_2(%arg0: i32) -> (i32, i32) {
    %c0_i32 = arith.constant 0 : i32
    %c0_i32_0 = arith.constant 0 : i32
    return %arg0, %c0_i32 : i32, i32
  }
}

</mosaic_0001>

<bundles_post_ra>
// kernel: tpu_custom_call.1
= control target key start
LH: loop header
LB: loop body
LE: loop exit
PB: predicated region body
PF: predicated region fallthrough
CT: control target
= control target key end

     0   :  { %s1363_s9 = smov 0   ;;  %s1698_s0 = inlined_call_operand.vmem [shape: f32[128,4], index: 0, kind: input, shape index: {}]   ;;  %s1699_s1 = inlined_call_operand.vmem [shape: f32[16,128], index: 1, kind: input, shape index: {}]   ;;  %s1700_s2 = inlined_call_operand.vmem [shape: f32[16,4], index: 2, kind: output, shape index: {}]  }
   0x1 LB: > { %s852_s10 = sadd.s32 4294967295, %s1343_s9   ;;  %p856_p0 = scmp.ge.s32.totalorder %s1343_s9, 1  ;;  %s1343_s9 = sphi %s1363_s9, %s12_s9  }
   0x2   : > { %p111_p1 = scmp.lt.s32.totalorder %s1343_s9, 3 }
   0x4   : > { %p112_p2 = pnand %p856_p0, %p111_p1 }
   0x5   : > { %v140_v0 = vld [vmem:[%s1698_s0] sm:$0xff] (!%p112_p2)  ;;  %v141_v1 = vld [vmem:[%s1698_s0 + $0x8] sm:$0xff] (!%p112_p2)  ;;  %v142_v2 = vld [vmem:[%s1698_s0 + $0x10] sm:$0xff] (!%p112_p2)  ;;  %v1345_v3 = vmov (!%p112_p2), 0.0|0.0   ;;  %vm1346_vm0 = vmmov (!%p112_p2), 0   ;;  %v1347_v11 = vmov (!%p112_p2), 0.0  }
   0x6   : > { %115 = sbr.rel (%p112_p2) target bundleno = 320 (0x140), region = 28  ;;  %1173 = vmatprep.subr.bf16.mxu1 (!%p112_p2), %v1345_v3  ;;  %1245 = vmatprep.subr.bf16.mxu0 (!%p112_p2), %v1345_v3  ;;  %v157_v4 = vand.u32 (!%p112_p2), 4294901760, %v140_v0  ;;  %v160_v5 = vand.u32 (!%p112_p2), 4294901760, %v141_v1  ;;  %v143_v6 = vld [vmem:[%s1698_s0 + $0x18] sm:$0xff] (!%p112_p2)  ;;  %v163_v7 = vand.u32 (!%p112_p2), 4294901760, %v142_v2  ;;  %v1388_v9 = vld [vmem:[%s1698_s0 + $0x20] sm:$0xff] (!%p112_p2) }
   0x7   : > { %v166_v8 = vand.u32 (!%p112_p2), 4294901760, %v143_v6  ;;  %v1393_v10 = vld [vmem:[%s1698_s0 + $0x28] sm:$0xff] (!%p112_p2)  ;;  %995 = vmatprep.mubr.msk.f32.mxu1 (!%p112_p2), %vm1346_vm0, %v1347_v11  ;;  %1100 = vmatprep.mubr.msk.f32.mxu0 (!%p112_p2), %vm1346_vm0, %v1347_v11  ;;  %p131_p3 = scmp.lt.s32.totalorder (!%p112_p2), %s852_s10, 1  ;;  %v169_v14 = vand.u32 (!%p112_p2), 4294901760, %v1388_v9  ;;  %v1414_v16 = vld [vmem:[%s1698_s0 + $0x30] sm:$0xff] (!%p112_p2)  ;;  %v1419_v17 = vld [vmem:[%s1698_s0 + $0x38] sm:$0xff] (!%p112_p2) }
   0x8   : > { %v1399_v12 = vpack.c.bf16 (!%p112_p2), %v160_v5, %v157_v4  ;;  %v172_v15 = vand.u32 (!%p112_p2), 4294901760, %v1393_v10  ;;  %v175_v19 = vand.u32 (!%p112_p2), 4294901760, %v1414_v16  ;;  %v178_v20 = vand.u32 (!%p112_p2), 4294901760, %v1419_v17  ;;  %v1433_v21 = vld [vmem:[%s1698_s0 + $0x40] sm:$0xff] (!%p112_p2)  ;;  %v1438_v22 = vld [vmem:[%s1698_s0 + $0x48] sm:$0xff] (!%p112_p2)  ;;  %v1456_v27 = vld [vmem:[%s1698_s0 + $0x50] sm:$0xff] (!%p112_p2) }
   0x9   : > { %v1403_v13 = vpack.c.bf16 (!%p112_p2), %v166_v8, %v163_v7  ;;  %v181_v24 = vand.u32 (!%p112_p2), 4294901760, %v1433_v21  ;;  %v184_v25 = vand.u32 (!%p112_p2), 4294901760, %v1438_v22  ;;  %v1461_v28 = vld [vmem:[%s1698_s0 + $0x58] sm:$0xff] (!%p112_p2)  ;;  %v1463_v29 = vsub.f32 (!%p112_p2), %v140_v0, %v157_v4  ;;  %v1478_v35 = vld [vmem:[%s1698_s0 + $0x60] sm:$0xff] (!%p112_p2)  ;;  %v1485_v36 = vld [vmem:[%s1698_s0 + $0x68] sm:$0xff] (!%p112_p2) }
   0xa   : > { %1175 = vmatpush3.bf16.msra.mxu1 (!%p112_p2), %v1399_v12  ;;  %1247 = vmatpush3.bf16.msra.mxu0 (!%p112_p2), %v1399_v12  ;;  %v1424_v18 = vpack.c.bf16 (!%p112_p2), %v172_v15, %v169_v14  ;;  %v1447_v23 = vpack.c.bf16 (!%p112_p2), %v178_v20, %v175_v19  ;;  %v1467_v31 = vsub.f32 (!%p112_p2), %v141_v1, %v160_v5  ;;  %v187_v33 = vand.u32 (!%p112_p2), 4294901760, %v1456_v27  ;;  %v1507_v43 = vld [vmem:[%s1698_s0 + $0x70] sm:$0xff] (!%p112_p2)  ;;  %v1512_v44 = vld [vmem:[%s1698_s0 + $0x78] sm:$0xff] (!%p112_p2) }
   0xb   : > { %1176 = vmatprep.subr.bf16.mxu1 (!%p112_p2), %v1345_v3  ;;  %1248 = vmatprep.subr.bf16.mxu0 (!%p112_p2), %v1345_v3  ;;  %v1471_v32 = vpack.c.bf16 (!%p112_p2), %v184_v25, %v181_v24  ;;  %v190_v34 = vand.u32 (!%p112_p2), 4294901760, %v1461_v28  ;;  %v1487_v37 = vsub.f32 (!%p112_p2), %v142_v2, %v163_v7  ;;  %v1489_v38 = vsub.f32 (!%p112_p2), %v143_v6, %v166_v8 }
   0xc   : > { %v193_v39 = vand.u32 (!%p112_p2), 4294901760, %v1478_v35  ;;  %v196_v42 = vand.u32 (!%p112_p2), 4294901760, %v1485_v36  ;;  %v250_v45 = vand.u32 (!%p112_p2), 4294901760, %v1463_v29  ;;  %v257_v46 = vand.u32 (!%p112_p2), 4294901760, %v1467_v31 }
   0xd   : > { %s1702_s10 = smov (!%p131_p3, %s852_s10), 1  ;;  %v1501_v41 = vpack.c.bf16 %v190_v34, %v187_v33  ;;  %v1519_v47 = vsub.f32 %v1388_v9, %v169_v14  ;;  %v1522_v48 = vsub.f32 %v1393_v10, %v172_v15  ;;  %v199_v49 = vand.u32 4294901760, %v1507_v43 }
   0xe   : > { %s857_s27 = sshll.u32 %s1702_s10, 3  ;;  %1178 = vmatpush3.bf16.msra.mxu1 %v1403_v13  ;;  %1250 = vmatpush3.bf16.msra.mxu0 %v1403_v13  ;;  %v202_v50 = vand.u32 4294901760, %v1512_v44  ;;  %v264_v52 = vand.u32 4294901760, %v1487_v37  ;;  %v1534_v53 = vpack.c.bf16 %v196_v42, %v193_v39  ;;  %v251_v54 = vsub.f32 %v1463_v29, %v250_v45 }
   0xf   : > { %1179 = vmatprep.subr.bf16.mxu1 %v1345_v3  ;;  %1251 = vmatprep.subr.bf16.mxu0 %v1345_v3  ;;  %s134_s6 = scalar_lea.vmem %s1699_s1, %s857_s27  ;;  %v258_v55 = vsub.f32 %v1467_v31, %v257_v46  ;;  %v271_v56 = vand.u32 4294901760, %v1489_v38  ;;  %v1542_v57 = vsub.f32 %v1414_v16, %v175_v19  ;;  %v1545_v58 = vsub.f32 %v1419_v17, %v178_v20  ;;  %s138_s23 = scalar_lea.vmem %s1700_s2, %s857_s27 }
  0x10   : > { %v139_v26 = vld [vmem:[%s134_s6] sm:$0xff]  ;;  %v265_v60 = vsub.f32 %v1487_v37, %v264_v52  ;;  %v278_v61 = vand.u32 4294901760, %v1519_v47  ;;  %v285_v62 = vand.u32 4294901760, %v1522_v48  ;;  %v1557_v63 = vpack.c.bf16 %v202_v50, %v199_v49 }
  0x11   : > { %v1465_v30 = vand.u32 4294901760, %v139_v26  ;;  %v252_v0 = vand.u32 4294901760, %v251_v54  ;;  %v259_v1 = vand.u32 4294901760, %v258_v55  ;;  %v272_v2 = vsub.f32 %v1489_v38, %v271_v56 }
  0x12   : > { %1181 = vmatpush3.bf16.msra.mxu1 %v1424_v18  ;;  %1253 = vmatpush3.bf16.msra.mxu0 %v1424_v18  ;;  %v1563_v4 = vsub.f32 %v1433_v21, %v181_v24  ;;  %v1566_v5 = vsub.f32 %v1438_v22, %v184_v25  ;;  %v1270_v6 = vpack.c.bf16 %v257_v46, %v250_v45  ;;  %v266_v8 = vand.u32 4294901760, %v265_v60 }
  0x13   : > { %1182 = vmatprep.subr.bf16.mxu1 %v1345_v3  ;;  %1254 = vmatprep.subr.bf16.mxu0 %v1345_v3  ;;  %v1493_v40 = vsub.f32 %v139_v26, %v1465_v30  ;;  %v279_v9 = vsub.f32 %v1519_v47, %v278_v61  ;;  %v286_v10 = vsub.f32 %v1522_v48, %v285_v62  ;;  %v273_v15 = vand.u32 4294901760, %v272_v2 }
  0x14   : > { %v1198_v14 = vpack.c.bf16 %v259_v1, %v252_v0  ;;  %v292_v16 = vand.u32 4294901760, %v1542_v57  ;;  %v299_v17 = vand.u32 4294901760, %v1545_v58  ;;  %v1579_v19 = vsub.f32 %v1456_v27, %v187_v33 }
  0x15   : > { %v239_v51 = vand.u32 4294901760, %v1493_v40  ;;  %v1584_v20 = vsub.f32 %v1461_v28, %v190_v34  ;;  %v1273_v21 = vpack.c.bf16 %v271_v56, %v264_v52  ;;  %v280_v22 = vand.u32 4294901760, %v279_v9 }
  0x16   : > { %1184 = vmatpush3.bf16.msra.mxu1 %v1447_v23  ;;  %1256 = vmatpush3.bf16.msra.mxu0 %v1447_v23  ;;  %v287_v24 = vand.u32 4294901760, %v286_v10  ;;  %v306_v25 = vand.u32 4294901760, %v1563_v4  ;;  %v1201_v26 = vpack.c.bf16 %v273_v15, %v266_v8  ;;  %v293_v45 = vsub.f32 %v1542_v57, %v292_v16 }
  0x17   : > { %1185 = vmatprep.subr.bf16.mxu1 %v1345_v3  ;;  %1257 = vmatprep.subr.bf16.mxu0 %v1345_v3  ;;  %v240_v59 = vsub.f32 %v1493_v40, %v239_v51  ;;  %v300_v27 = vsub.f32 %v1545_v58, %v299_v17  ;;  %v313_v33 = vand.u32 4294901760, %v1566_v5  ;;  %v1595_v28 = vsub.f32 %v1478_v35, %v193_v39 }
  0x18   : > { %v1600_v34 = vsub.f32 %v1485_v36, %v196_v42  ;;  %v1204_v46 = vpack.c.bf16 %v287_v24, %v280_v22  ;;  %v307_v52 = vsub.f32 %v1563_v4, %v306_v25  ;;  %v320_v54 = vand.u32 4294901760, %v1579_v19 }
  0x19   : > { %v241_v7 = vand.u32 4294901760, %v240_v59  ;;  %v294_v35 = vand.u32 4294901760, %v293_v45  ;;  %v301_v39 = vand.u32 4294901760, %v300_v27  ;;  %v314_v55 = vsub.f32 %v1566_v5, %v313_v33 }
  0x1a   : > { %1187 = vmatpush3.bf16.msra.mxu1 %v1471_v32  ;;  %1259 = vmatpush3.bf16.msra.mxu0 %v1471_v32  ;;  %v327_v36 = vand.u32 4294901760, %v1584_v20  ;;  %v1615_v42 = vsub.f32 %v1507_v43, %v199_v49  ;;  %v1620_v56 = vsub.f32 %v1512_v44, %v202_v50  ;;  %v1279_v59 = vpack.c.bf16 %v299_v17, %v292_v16 }
  0x1b   : > { %1188 = vmatprep.subr.bf16.mxu1 %v1345_v3  ;;  %1260 = vmatprep.subr.bf16.mxu0 %v1345_v3  ;;  %v308_v60 = vand.u32 4294901760, %v307_v52  ;;  %v1207_v0 = vpack.c.bf16 %v301_v39, %v294_v35  ;;  %v315_v1 = vand.u32 4294901760, %v314_v55  ;;  %v341_v43 = vand.u32 4294901760, %v1600_v34 }
  0x1c   : > { %v328_v2 = vsub.f32 %v1584_v20, %v327_v36  ;;  %v1282_v44 = vpack.c.bf16 %v313_v33, %v306_v25  ;;  %v355_v10 = vand.u32 4294901760, %v1620_v56  ;;  %vm797_vm1 = vcmask 31744  }
  0x1d   : > { %v342_v9 = vsub.f32 %v1600_v34, %v341_v43 }
  0x1e   : > { %1190 = vmatpush3.bf16.msra.mxu1 %v1501_v41  ;;  %1262 = vmatpush3.bf16.msra.mxu0 %v1501_v41  ;;  %v329_v8 = vand.u32 4294901760, %v328_v2  ;;  %v356_v22 = vsub.f32 %v1620_v56, %v355_v10 }
  0x1f   : > { %1191 = vmatprep.subr.bf16.mxu1 %v1345_v3  ;;  %1263 = vmatprep.subr.bf16.mxu0 %v1345_v3  ;;  %v343_v17 = vand.u32 4294901760, %v342_v9 }
  0x20   : > { %v357_v45 = vand.u32 4294901760, %v356_v22 }
  0x22   : > { %1193 = vmatpush3.bf16.msra.mxu1 %v1534_v53  ;;  %1265 = vmatpush3.bf16.msra.mxu0 %v1534_v53 }
  0x23   : > { %1194 = vmatprep.subr.bf16.mxu1 %v1345_v3  ;;  %1266 = vmatprep.subr.bf16.mxu0 %v1345_v3 }
  0x26   : > { %1196 = vmatpush3.bf16.msra.mxu1 %v1557_v63  ;;  %1268 = vmatpush3.bf16.msra.mxu0 %v1557_v63 }
  0x27   : > { %1197 = vmatprep.subr.bf16.mxu1 %v1345_v3  ;;  %1269 = vmatprep.subr.bf16.mxu0 %v1345_v3 }
  0x29   : > { %996 = vmatmul.mubr.f32.vlgmr.msra.gmra.mrb[0].mxu1 %v241_v7  ;;  %1101 = vmatmul.mubr.f32.vlgmr.msra.gmra.mrb[0].mxu0 %v239_v51  ;;  %v1276_v51 = vpack.c.bf16 %v285_v62, %v278_v61  ;;  %v321_v61 = vsub.f32 %v1579_v19, %v320_v54  ;;  %v334_v62 = vand.u32 4294901760, %v1595_v28  ;;  %v1210_v7 = vpack.c.bf16 %v315_v1, %v308_v60 }
  0x2a   : > { %1199 = vmatpush3.bf16.msra.mxu1 %v1198_v14  ;;  %1271 = vmatpush3.bf16.msra.mxu0 %v1270_v6  ;;  %v348_v6 = vand.u32 4294901760, %v1615_v42  ;;  %v1285_v14 = vpack.c.bf16 %v327_v36, %v320_v54 }
  0x2b   : > { %1200 = vmatprep.subr.bf16.mxu1 %v1345_v3  ;;  %1272 = vmatprep.subr.bf16.mxu0 %v1345_v3  ;;  %v322_v49 = vand.u32 4294901760, %v321_v61  ;;  %v335_v50 = vsub.f32 %v1595_v28, %v334_v62  ;;  %v1288_v25 = vpack.c.bf16 %v341_v43, %v334_v62 }
  0x2c   : > { %1030 = vmatprep.mubr.msk.f32.mxu1 %vm1346_vm0, %v1347_v11  ;;  %1135 = vmatprep.mubr.msk.f32.mxu0 %vm1346_vm0, %v1347_v11  ;;  %v1291_v33 = vpack.c.bf16 %v355_v10, %v348_v6 }
  0x2d   : > { %v336_v15 = vand.u32 4294901760, %v335_v50  ;;  %v1213_v16 = vpack.c.bf16 %v329_v8, %v322_v49 }
  0x2e   : > { %1202 = vmatpush3.bf16.msra.mxu1 %v1201_v26  ;;  %1274 = vmatpush3.bf16.msra.mxu0 %v1273_v21  ;;  %v349_v21 = vsub.f32 %v1615_v42, %v348_v6 }
  0x2f   : > { %1203 = vmatprep.subr.bf16.mxu1 %v1345_v3  ;;  %1275 = vmatprep.subr.bf16.mxu0 %v1345_v3  ;;  %v1216_v24 = vpack.c.bf16 %v343_v17, %v336_v15 }
  0x30   : > { %v350_v26 = vand.u32 4294901760, %v349_v21 }
  0x32   : > { %1205 = vmatpush3.bf16.msra.mxu1 %v1204_v46  ;;  %1277 = vmatpush3.bf16.msra.mxu0 %v1276_v51  ;;  %v1219_v27 = vpack.c.bf16 %v357_v45, %v350_v26  ;;  %v1222_v46 = vpack.c.bf16 %v1467_v31, %v1463_v29  ;;  %v1225_v51 = vpack.c.bf16 %v1489_v38, %v1487_v37 }
  0x33   : > { %1206 = vmatprep.subr.bf16.mxu1 %v1345_v3  ;;  %1278 = vmatprep.subr.bf16.mxu0 %v1345_v3  ;;  %v1228_v29 = vpack.c.bf16 %v1522_v48, %v1519_v47 }
  0x36   : > { %1208 = vmatpush3.bf16.msra.mxu1 %v1207_v0  ;;  %1280 = vmatpush3.bf16.msra.mxu0 %v1279_v59 }
  0x37   : > { %1209 = vmatprep.subr.bf16.mxu1 %v1345_v3  ;;  %1281 = vmatprep.subr.bf16.mxu0 %v1345_v3 }
  0x3a   : > { %1211 = vmatpush3.bf16.msra.mxu1 %v1210_v7  ;;  %1283 = vmatpush3.bf16.msra.mxu0 %v1282_v44 }
  0x3b   : > { %1212 = vmatprep.subr.bf16.mxu1 %v1345_v3  ;;  %1284 = vmatprep.subr.bf16.mxu0 %v1345_v3 }
  0x3e   : > { %1214 = vmatpush3.bf16.msra.mxu1 %v1213_v16  ;;  %1286 = vmatpush3.bf16.msra.mxu0 %v1285_v14 }
  0x3f   : > { %1215 = vmatprep.subr.bf16.mxu1 %v1345_v3  ;;  %1287 = vmatprep.subr.bf16.mxu0 %v1345_v3 }
  0x42   : > { %1217 = vmatpush3.bf16.msra.mxu1 %v1216_v24  ;;  %1289 = vmatpush3.bf16.msra.mxu0 %v1288_v25 }
  0x43   : > { %1218 = vmatprep.subr.bf16.mxu1 %v1345_v3  ;;  %1290 = vmatprep.subr.bf16.mxu0 %v1345_v3 }
  0x46   : > { %1220 = vmatpush3.bf16.msra.mxu1 %v1219_v27  ;;  %1292 = vmatpush3.bf16.msra.mxu0 %v1291_v33 }
  0x47   : > { %1221 = vmatprep.subr.bf16.mxu1 %v1345_v3  ;;  %1293 = vmatprep.subr.bf16.mxu0 %v1345_v3 }
  0x49   : > { %1031 = vmatmul.mubr.f32.vlgmr.msra.gmra.mrb[0].mxu1 %v1465_v30  ;;  %1136 = vmatmul.mubr.f32.vlgmr.msra.gmra.mrb[0].mxu0 %v1465_v30 }
  0x4a   : > { %1223 = vmatpush3.bf16.msra.mxu1 %v1222_v46  ;;  %1295 = vmatpush3.bf16.msra.mxu0 %v1399_v12  ;;  %v1231_v12 = vpack.c.bf16 %v1545_v58, %v1542_v57 }
  0x4b   : > { %1224 = vmatprep.subr.bf16.mxu1 %v1345_v3  ;;  %1296 = vmatprep.subr.bf16.mxu0 %v1345_v3 }
  0x4c   : > { %1065 = vmatprep.mubr.msk.f32.mxu1 %vm1346_vm0, %v1347_v11  ;;  %1170 = vmatprep.mubr.msk.f32.mxu0 %vm1346_vm0, %v1347_v11  ;;  %v1234_v11 = vpack.c.bf16 %v1566_v5, %v1563_v4 }
  0x4e   : > { %1226 = vmatpush3.bf16.msra.mxu1 %v1225_v51  ;;  %1298 = vmatpush3.bf16.msra.mxu0 %v1403_v13  ;;  %v1237_v13 = vpack.c.bf16 %v1584_v20, %v1579_v19 }
  0x4f   : > { %1227 = vmatprep.subr.bf16.mxu1 %v1345_v3  ;;  %1299 = vmatprep.subr.bf16.mxu0 %v1345_v3 }
  0x52   : > { %1229 = vmatpush3.bf16.msra.mxu1 %v1228_v29  ;;  %1301 = vmatpush3.bf16.msra.mxu0 %v1424_v18  ;;  %v1240_v18 = vpack.c.bf16 %v1600_v34, %v1595_v28 }
  0x53   : > { %1230 = vmatprep.subr.bf16.mxu1 %v1345_v3  ;;  %1302 = vmatprep.subr.bf16.mxu0 %v1345_v3 }
  0x56   : > { %1232 = vmatpush3.bf16.msra.mxu1 %v1231_v12  ;;  %1304 = vmatpush3.bf16.msra.mxu0 %v1447_v23  ;;  %v1243_v23 = vpack.c.bf16 %v1620_v56, %v1615_v42 }
  0x57   : > { %1233 = vmatprep.subr.bf16.mxu1 %v1345_v3  ;;  %1305 = vmatprep.subr.bf16.mxu0 %v1345_v3 }
  0x5a   : > { %1235 = vmatpush3.bf16.msra.mxu1 %v1234_v11  ;;  %1307 = vmatpush3.bf16.msra.mxu0 %v1471_v32 }
  0x5b   : > { %1236 = vmatprep.subr.bf16.mxu1 %v1345_v3  ;;  %1308 = vmatprep.subr.bf16.mxu0 %v1345_v3 }
  0x5e   : > { %1238 = vmatpush3.bf16.msra.mxu1 %v1237_v13  ;;  %1310 = vmatpush3.bf16.msra.mxu0 %v1501_v41 }
  0x5f   : > { %1239 = vmatprep.subr.bf16.mxu1 %v1345_v3  ;;  %1311 = vmatprep.subr.bf16.mxu0 %v1345_v3 }
  0x62   : > { %1241 = vmatpush3.bf16.msra.mxu1 %v1240_v18  ;;  %1313 = vmatpush3.bf16.msra.mxu0 %v1534_v53 }
  0x63   : > { %1242 = vmatprep.subr.bf16.mxu1 %v1345_v3  ;;  %1314 = vmatprep.subr.bf16.mxu0 %v1345_v3 }
  0x66   : > { %1244 = vmatpush3.bf16.msra.mxu1 %v1243_v23  ;;  %1316 = vmatpush3.bf16.msra.mxu0 %v1557_v63 }
  0x69   : > { %1066 = vmatmul.mubr.f32.vlgmr.msra.gmra.mrb[0].mxu1 %v1493_v40  ;;  %1171 = vmatmul.mubr.f32.vlgmr.msra.gmra.mrb[0].mxu0 %v1465_v30 }
 0x13c   : > { %v498_v31 = vpop.f32.mrb[0].mxu1  ;;  %v793_v32 = vpop.f32.mrb[0].mxu0 }
 0x13d   : > { %v1317_v37 = vadd.f32 %v793_v32, %v498_v31  ;;  %v1067_v38 = vpop.f32.mrb[1].mxu1  ;;  %v1172_v41 = vpop.f32.mrb[1].mxu0 }
 0x13f   : > { %798 = vst.msk [vmem:[%s138_s23] sm:$0xff] %vm797_vm1, %v1317_v37 }
 0x140 PF: > { %s12_s9 = sadd.s32 1, %s1343_s9  }
 0x141   : > { %p9_p4 = scmp.ge.s32.totalorder %s12_s9, 4  }
 0x143   :  { %11 = sbr.rel (!%p9_p4) target bundleno = 1 (0x1), region = 58 }

</bundles_post_ra>
